<compile_context>
chip_gen: v5e
topology: v5e:2x2
jax: 0.10.0
libtpu: 0.0.40
codegen_flags: <defaults>
</compile_context>

<pallas_src>
import jax
import jax.numpy as jnp
from jax import lax
from jax.experimental import pallas as pl
from jax.experimental.pallas import tpu as pltpu


def _pick_tile(dim, candidates):
    """Largest candidate that evenly divides `dim`; else the full dim (always legal)."""
    for c in candidates:
        if c <= dim and dim % c == 0:
            return c
    return dim


def _conv_format_embedding_kernel(tok_ref, tab_ref, out_ref):
    # tok_ref: (1, tn)  int32   -- flattened (b*S + s) token ids for this N tile
    # tab_ref: (tk, td) float32 -- (V, D)-layout table slab for this V tile
    # out_ref: (td, tn) float32 -- channels-first output tile, resident across k
    k = pl.program_id(2)
    tk = tab_ref.shape[0]
    tn = tok_ref.shape[1]

    @pl.when(k == 0)
    def _():
        out_ref[...] = jnp.zeros_like(out_ref)

    tok = tok_ref[0, :]                                              # (tn,)
    v_ids = k * tk + lax.broadcasted_iota(jnp.int32, (tk, tn), 0)    # global vocab ids
    onehot = (v_ids == tok[None, :]).astype(tab_ref.dtype)           # (tk, tn)

    # out[d, n] += sum_v table[v, d] * onehot[v, n]   (contract V of both operands)
    out_ref[...] += lax.dot_general(
        tab_ref[...], onehot,
        dimension_numbers=(((0,), (0,)), ((), ())),
        preferred_element_type=jnp.float32)


def conv_format_embedding(tokens, emb_table):
    """tokens: (B, S) int, emb_table: (V, D) float32 -> (B, D, S) float32."""
    B, S = tokens.shape
    V, D = emb_table.shape
    N = B * S
    Np = ((N + 127) // 128) * 128            # lane-dense flattened N

    tok = tokens.reshape(1, N).astype(jnp.int32)
    if Np != N:
        # -1 never matches any vocab id -> padded columns are zero and sliced off.
        tok = jnp.pad(tok, ((0, 0), (0, Np - N)), constant_values=-1)

    tn = _pick_tile(Np, (256, 128))                 # lane dim of output tile
    td = _pick_tile(D, (256, 128))                  # sublane dim of output tile
    tk = _pick_tile(V, (1024, 512, 256, 128))       # V reduction tile

    grid = (D // td, Np // tn, V // tk)

    out_dn = pl.pallas_call(
        _conv_format_embedding_kernel,
        out_shape=jax.ShapeDtypeStruct((D, Np), jnp.float32),
        grid_spec=pltpu.PrefetchScalarGridSpec(
            num_scalar_prefetch=0,
            grid=grid,
            in_specs=[
                pl.BlockSpec((1, tn), lambda d, n, k: (0, n)),    # flattened token ids
                pl.BlockSpec((tk, td), lambda d, n, k: (k, d)),   # (V, D) table slab
            ],
            out_specs=pl.BlockSpec((td, tn), lambda d, n, k: (d, n)),
        ),
        compiler_params=pltpu.CompilerParams(
            dimension_semantics=("parallel", "parallel", "arbitrary")),
    )(tok, emb_table)

    # (D, B*S) -> (B, D, S): output-sized reshuffle in the wrapper (tiny vs table traffic).
    return out_dn[:, :N].reshape(D, B, S).transpose(1, 0, 2)


if __name__ == "__main__":
    # Module config: nn.Embedding(num_embeddings=V, embedding_dim=D)
    B, S, V, D = 2, 8, 16, 32

    key = jax.random.PRNGKey(0)
    k_tok, k_emb = jax.random.split(key)
    tokens = jax.random.randint(k_tok, (B, S), 0, V, dtype=jnp.int32)
    # nn.Embedding default init: weight ~ N(0, 1)
    emb_table = jax.random.normal(k_emb, (V, D), dtype=jnp.float32)

    out = conv_format_embedding(tokens, emb_table)
    out = jax.block_until_ready(out)

    # Reference: emb(x).permute(0, 2, 1)
    ref = jnp.transpose(jnp.take(emb_table, tokens, axis=0), (0, 2, 1))
    assert out.shape == (B, D, S)
    assert jnp.allclose(out, ref, atol=1e-6), "mismatch vs reference"

    print("KERNEL_OK")
</pallas_src>

<mosaic_0001>
module attributes {stable_mosaic.version = 11 : i64} {
  func.func @_conv_format_embedding_kernel(%arg0: i32, %arg1: i32, %arg2: i32, %arg3: memref<1x128xi32, #tpu.memory_space<vmem>>, %arg4: memref<16x32xf32, #tpu.memory_space<vmem>>, %arg5: memref<32x128xf32, #tpu.memory_space<vmem>>) attributes {dimension_semantics = [#tpu.dimension_semantics<parallel>, #tpu.dimension_semantics<parallel>, #tpu.dimension_semantics<arbitrary>], iteration_bounds = array<i64: 1, 1, 1>, scalar_prefetch = 0 : i64, scratch_operands = 0 : i64, tpu.core_type = #tpu.core_type<tc>, window_params = [{transform_indices = @transform_0, window_bounds = array<i64: 1, 128>}, {transform_indices = @transform_1, window_bounds = array<i64: 16, 32>}, {transform_indices = @transform_2, window_bounds = array<i64: 32, 128>}]} {
    %c0_i32 = arith.constant 0 : i32
    %0 = arith.cmpi eq, %arg2, %c0_i32 : i32
    %1 = arith.extui %0 : i1 to i32
    %c0_i32_0 = arith.constant 0 : i32
    %2 = arith.cmpi ne, %1, %c0_i32_0 : i32
    scf.if %2 {
      %cst_8 = arith.constant 0.000000e+00 : f32
      %19 = vector.broadcast %cst_8 : f32 to vector<32x128xf32>
      %c0_9 = arith.constant 0 : index
      %c0_10 = arith.constant 0 : index
      %20 = vector.load %arg5[%c0_9, %c0_10] : memref<32x128xf32, #tpu.memory_space<vmem>>, vector<32x128xf32>
      tpu.vector_store %arg5[%c0_9, %c0_10], %19 {strides = array<i32>} : memref<32x128xf32, #tpu.memory_space<vmem>>, vector<32x128xf32>,
    } else {
    }
    %c0 = arith.constant 0 : index
    %c0_1 = arith.constant 0 : index
    %3 = vector.load %arg3[%c0, %c0_1] : memref<1x128xi32, #tpu.memory_space<vmem>>, vector<1x128xi32>
    %4 = vector.shape_cast %3 : vector<1x128xi32> to vector<128xi32>
    %c16_i32 = arith.constant 16 : i32
    %5 = arith.muli %arg2, %c16_i32 : i32
    %6 = tpu.iota {dimensions = array<i32: 0>} : vector<16x128xi32>
    %7 = vector.broadcast %5 : i32 to vector<16x128xi32>
    %8 = arith.addi %7, %6 : vector<16x128xi32>
    %9 = vector.shape_cast %4 : vector<128xi32> to vector<1x128xi32>
    %10 = vector.broadcast %9 : vector<1x128xi32> to vector<16x128xi32>
    %11 = arith.cmpi eq, %8, %10 : vector<16x128xi32>
    %12 = arith.extui %11 : vector<16x128xi1> to vector<16x128xi32>
    %13 = arith.sitofp %12 : vector<16x128xi32> to vector<16x128xf32>
    %c0_2 = arith.constant 0 : index
    %c0_3 = arith.constant 0 : index
    %14 = vector.load %arg5[%c0_2, %c0_3] : memref<32x128xf32, #tpu.memory_space<vmem>>, vector<32x128xf32>
    %c0_4 = arith.constant 0 : index
    %c0_5 = arith.constant 0 : index
    %15 = vector.load %arg4[%c0_4, %c0_5] : memref<16x32xf32, #tpu.memory_space<vmem>>, vector<16x32xf32>
    %cst = arith.constant dense<0.000000e+00> : vector<32x128xf32>
    %16 = tpu.matmul %15, %13, %cst {dimension_numbers = #tpu.dot_dimension_numbers<[0], [0], [1], [1], [0, 1, 1, 1], [], []>} : vector<16x32xf32>, vector<16x128xf32>, vector<32x128xf32> -> vector<32x128xf32>
    %17 = arith.addf %14, %16 : vector<32x128xf32>
    %c0_6 = arith.constant 0 : index
    %c0_7 = arith.constant 0 : index
    %18 = vector.load %arg5[%c0_6, %c0_7] : memref<32x128xf32, #tpu.memory_space<vmem>>, vector<32x128xf32>
    tpu.vector_store %arg5[%c0_6, %c0_7], %17 {strides = array<i32>} : memref<32x128xf32, #tpu.memory_space<vmem>>, vector<32x128xf32>,
    return
  }
  func.func @transform_0(%arg0: i32, %arg1: i32, %arg2: i32) -> (i32, i32) {
    %c0_i32 = arith.constant 0 : i32
    %c0_i32_0 = arith.constant 0 : i32
    return %c0_i32, %arg1 : i32, i32
  }
  func.func @transform_1(%arg0: i32, %arg1: i32, %arg2: i32) -> (i32, i32) {
    %c0_i32 = arith.constant 0 : i32
    return %arg2, %arg0 : i32, i32
  }
  func.func @transform_2(%arg0: i32, %arg1: i32, %arg2: i32) -> (i32, i32) {
    %c0_i32 = arith.constant 0 : i32
    return %arg0, %arg1 : i32, i32
  }
}

</mosaic_0001>

<bundles_post_ra>
// kernel: tpu_custom_call.1
= control target key start
LH: loop header
LB: loop body
LE: loop exit
PB: predicated region body
PF: predicated region fallthrough
CT: control target
= control target key end

     0   :  { %7 = vsyncpa [#allocation3], 0  ;;  %s309_s0 = inlined_call_operand.hbm [shape: s32[1,128], index: 0, kind: input, shape index: {}]   ;;  %s310_s1 = inlined_call_operand.hbm [shape: f32[16,32], index: 1, kind: input, shape index: {}]   ;;  %s311_s2 = inlined_call_operand.hbm [shape: f32[32,128], index: 2, kind: output, shape index: {}]  }
   0x1   :  { %8 = vsyncpa [#allocation6], 0 }
   0x2   :  { %9 = vsyncpa [#allocation4], 0  ;;  %s15_s11 = sshll.u32 %s309_s0, 4  ;;  %s273_s12 = smov [#allocation2]   ;;  %s16_s11 = int_to_ptr.hbm [resolvable:$true] %s15_s11 }
   0x3   :  { %s17_s13 = sshll.u32 %s273_s12, 4  ;;  %s25_s16 = sshll.u32 %s310_s1, 4  ;;  %s18_s13 = int_to_ptr.vmem [resolvable:$true] %s17_s13  ;;  %s26_s16 = int_to_ptr.hbm [resolvable:$true] %s25_s16 }
   0x4   :  { %20 = dma.hbm_to_vmem [thread:$0]  %s16_s11, 16, %s18_s13, [#allocation3]  }
   0x5   :  { %s274_s17 = smov [#allocation5]   ;;  %s275_s19 = smov 128  }
   0x6   :  { %s27_s18 = sshll.u32 %s274_s17, 4  ;;  %s276_s20 = smov 8   ;;  %s28_s18 = int_to_ptr.vmem [resolvable:$true] %s27_s18 }
   0x7   :  { %33 = dma.hbm_to_vmem [thread:$0]  %s26_s16, 256, %s28_s18, [#allocation6], %s275_s19, %s275_s19, %s276_s20  }
   0x8   :  { %267 = dma.done.wait [#allocation3], 16  }
   0x9   :  { %268 = vsyncadd [#allocation3], 4294967280 }
   0xa   :  { %269 = dma.done.wait [#allocation6], 256  }
   0xb   :  { %270 = vsyncadd [#allocation6], 4294967040  ;;  %v52_v0 = vlaneseq  ;;  %v69_v3 = vld [vmem:[#allocation5] sm:$0xff]  ;;  %v194_v4 = vld [vmem:[#allocation2] ss:$0 sm:$0xff]  ;;  %v277_v5 = vmov 1.0  }
   0xc   :  { %71 = vxpose.xlu0.b32.start [1/2] (short) (narrow) %v69_v3, 32  ;;  %v70_v6 = vld [vmem:[#allocation5 + $0x8] sm:$0xff]  ;;  %vm103_vm2 = vcmask 130048   ;;  %s278_s0 = smov [#allocation7]   ;;  %s159_s23 = sshll.u32 %s311_s2, 4  ;;  %s160_s23 = int_to_ptr.hbm [resolvable:$true] %s159_s23 }
   0xd   :  { %v53_v1 = vshrl.u32 %v52_v0, 7  ;;  %s157_s1 = sshll.u32 %s278_s0, 4  ;;  %s158_s1 = int_to_ptr.vmem [resolvable:$true] %s157_s1 }
   0xf   :  { %v54_v2 = vadd.s32 8, %v53_v1  ;;  %vm59_vm1 = vcmp.eq.s32.totalorder %v53_v1, %v194_v4 }
  0x11   :  { %vm60_vm0 = vcmp.eq.s32.totalorder %v54_v2, %v194_v4 }
  0x12   :  { %175 = vmatpush.msk.msra.mxu0 %vm60_vm0, %v277_v5  ;;  %181 = vmatpush.msk.msra.mxu1 %vm60_vm0, %v277_v5 }
  0x13   :  { %182 = vmatpush.msk.msra.mxu2 %vm60_vm0, %v277_v5  ;;  %183 = vmatpush.msk.msra.mxu3 %vm60_vm0, %v277_v5 }
  0x14   :  { %72 = vxpose.xlu0.b32.end [2/2] (short) (narrow) %v70_v6, 32  ;;  %176 = vmatpush.msk.msra.mxu0 %vm59_vm1, %v277_v5 }
  0x15   :  { %184 = vmatpush.msk.msra.mxu1 %vm59_vm1, %v277_v5  ;;  %185 = vmatpush.msk.msra.mxu2 %vm59_vm1, %v277_v5 }
  0x16   :  { %186 = vmatpush.msk.msra.mxu3 %vm59_vm1, %v277_v5 }
  0xb0   :  { %v87_v7 = vpop.trf.xlu0 }
  0xb1   :  { %177 = vmatmul.msk.f32.vlgmr.msra.gmra.mxu0 %vm103_vm2, %v87_v7 }
  0xb8   :  { %v88_v8 = vpop.trf.xlu0 }
  0xb9   :  { %178 = vmatmul.msk.f32.vlgmr.msra.gmra.mxu1 %vm103_vm2, %v88_v8 }
  0xc0   :  { %v89_v9 = vpop.trf.xlu0 }
  0xc1   :  { %179 = vmatmul.msk.f32.vlgmr.msra.gmra.mxu2 %vm103_vm2, %v89_v9 }
  0xc8   :  { %v90_v10 = vpop.trf.xlu0 }
  0xc9   :  { %180 = vmatmul.msk.f32.vlgmr.msra.gmra.mxu3 %vm103_vm2, %v90_v10 }
 0x12e   :  { %v133_v11 = vpop.f32.mrf.mxu0 }
 0x12f   :  { %149 = vst [vmem:[#allocation7] sm:$0xff] %v133_v11 }
 0x136   :  { %v136_v12 = vpop.f32.mrf.mxu1 }
 0x137   :  { %150 = vst [vmem:[#allocation7 + $0x8] sm:$0xff] %v136_v12 }
 0x144   :  { %v139_v13 = vpop.f32.mrf.mxu2 }
 0x145   :  { %151 = vst [vmem:[#allocation7 + $0x10] sm:$0xff] %v139_v13 }
 0x14c   :  { %v142_v14 = vpop.f32.mrf.mxu3 }
 0x14d   :  { %152 = vst [vmem:[#allocation7 + $0x18] sm:$0xff] %v142_v14 }
 0x14e   :  { %165 = dma.vmem_to_hbm [thread:$0]  %s158_s1, 512, %s160_s23, [#allocation4], %s275_s19, %s275_s19, %s276_s20  }
 0x14f   :  { %271 = dma.done.wait [#allocation4], 512  }
 0x150   :  { %272 = vsyncadd [#allocation4], 4294966784 }
 0x151   :  { %170 = vsyncpa [#allocation3], 1 }
 0x152   :  { %171 = vsyncpa [#allocation6], 1 }
 0x153   :  { %172 = vsyncpa [#allocation4], 1 }

</bundles_post_ra>
